<compile_context>
chip_gen: v6e
topology: v6e:2x2x1
jax: 0.10.0
libtpu: 0.0.40
codegen_flags: <defaults>
</compile_context>

<pallas_src>
import functools
import math

import jax
import jax.numpy as jnp
from jax import lax
from jax.experimental import pallas as pl
from jax.experimental.pallas import tpu as pltpu


def _vmem_limit_bytes():
    # Generation-aware VMEM budget: ~80% of the physical per-core VMEM
    # (v5e/v6e: 128 MiB -> ~102 MiB, v7x: 64 MiB -> ~51 MiB); 64 MiB fallback.
    try:
        cap = int(pltpu.get_tpu_info().vmem_capacity_bytes)
        return max(32 * 1024 * 1024, min(int(cap * 0.8), 120 * 1024 * 1024))
    except Exception:
        return 64 * 1024 * 1024


_VMEM_LIMIT = _vmem_limit_bytes()
_LARGE_VMEM = _VMEM_LIMIT >= 80 * 1024 * 1024        # v5e / v6e (128 MiB VMEM)


def _round_up(x, m):
    return (x + m - 1) // m * m


def _pick_tile(dim, target, align):
    """Largest divisor of `dim` that is <= target and `align`-aligned, else dim."""
    if dim <= target:
        return dim
    for t in range(target, 0, -1):
        if dim % t == 0 and t % align == 0:
            return t
    # TODO(synk): pad N/K like M when no aligned divisor exists (rare for model
    # embed dims); falling back to the full dimension stays correct.
    return dim


# ----------------------------------------------------------------------------
# Tiled linear kernel:  o = x @ w.T + b   (torch linear convention, w is (N,K))
# ----------------------------------------------------------------------------
def _linear_kernel(x_ref, w_ref, b_ref, o_ref, acc_ref):
    k = pl.program_id(2)

    @pl.when(k == 0)
    def _():
        acc_ref[...] = jnp.zeros_like(acc_ref)

    # in-kernel cast (rides the VPU under the MXU); contract on the last dim of
    # both operands -> no transpose materialized
    x = x_ref[...].astype(w_ref.dtype)
    acc_ref[...] += lax.dot_general(
        x, w_ref[...],
        dimension_numbers=(((1,), (1,)), ((), ())),
        preferred_element_type=jnp.float32)

    @pl.when(k == pl.num_programs(2) - 1)
    def _():
        o_ref[...] = (acc_ref[...] + b_ref[...]).astype(o_ref.dtype)


def pallas_linear(x2d, w_c, b_row, *, out_dtype,
                  tm_target=None, tn_target=None, tk_target=512):
    """torch-style linear: x2d (M,K) any float dtype, w_c (N,K) compute dtype,
    b_row (1,N) f32 -> (M,N)."""
    if tm_target is None:
        tm_target = 512 if _LARGE_VMEM else 256
    if tn_target is None:
        tn_target = 1024 if _LARGE_VMEM else 512

    M, K = x2d.shape
    N = w_c.shape[0]

    # M = L*B can be awkward: pad it to a tile multiple instead of using one
    # huge / unaligned block.
    tm = min(tm_target, _round_up(M, 8))
    Mp = _round_up(M, tm)
    if Mp != M:
        x2d = jnp.pad(x2d, ((0, Mp - M), (0, 0)))

    tn = _pick_tile(N, tn_target, 128)    # minor of out & bias, 2nd-minor of w
    tk = _pick_tile(K, tk_target, 128)    # minor of x & w

    grid = (Mp // tm, N // tn, K // tk)
    out = pl.pallas_call(
        _linear_kernel,
        out_shape=jax.ShapeDtypeStruct((Mp, N), out_dtype),
        grid=grid,
        in_specs=[
            pl.BlockSpec((tm, tk), lambda i, j, k: (i, k)),
            pl.BlockSpec((tn, tk), lambda i, j, k: (j, k)),
            pl.BlockSpec((1, tn), lambda i, j, k: (0, j)),
        ],
        out_specs=pl.BlockSpec((tm, tn), lambda i, j, k: (i, j)),
        scratch_shapes=[pltpu.VMEM((tm, tn), jnp.float32)],
        compiler_params=pltpu.CompilerParams(
            dimension_semantics=("parallel", "parallel", "arbitrary"),
            vmem_limit_bytes=_VMEM_LIMIT),
    )(x2d, w_c, b_row)
    return out[:M] if Mp != M else out


# ----------------------------------------------------------------------------
# Fused attention kernel (scores + skewed RPR + softmax + P@V), per (batch,
# head-group).  q/k/v refs are sequence-major (L, hb, D) slices of the qkv
# projection output -> no HBM transpose is ever needed.
# ----------------------------------------------------------------------------
def _attn_rpr_kernel(q_ref, k_ref, v_ref, er_ref, o_ref, *maybe_w_ref,
                     inv_heads, need_weights, use_roll):
    L, hb, D = q_ref.shape
    w_ref = maybe_w_ref[0] if need_weights else None

    q = q_ref[...]                                  # (L, hb, D), pre-scaled
    k = k_ref[...]
    v = v_ref[...]
    er = er_ref[...]                                # (L, D)

    row = lax.broadcasted_iota(jnp.int32, (L, L), 0)
    col = lax.broadcasted_iota(jnp.int32, (L, L), 1)
    shift = (L - 1) - row                           # left-rotation amount / row
    keep = col <= row
    nbits = (L - 1).bit_length() if L > 1 else 0

    def skew(qe):
        # srel[t, j] = qe[t, L-1-t+j] for j <= t else 0 (Huang et al. 2018).
        # Per-row cyclic left-rotation by (L-1-t) as a log2(L) barrel shifter:
        # XLU lane rotate (pltpu.roll) when L is lane-aligned, concat fallback
        # otherwise; wrapped region (j > t) masked to zero.
        # TODO(synk): pltpu.roll(stride=1, stride_axis=0) could express the
        # whole per-row rotation in one XLU op; left as a follow-up.
        srel = qe
        for bit in range(nbits):
            c = 1 << bit
            if use_roll:
                rolled = pltpu.roll(srel, L - c, 1)     # left-rotate by c
            else:
                rolled = jnp.concatenate([srel[:, c:], srel[:, :c]], axis=1)
            srel = jnp.where((shift & c) != 0, rolled, srel)
        return jnp.where(keep, srel, 0.0)

    w_acc = jnp.zeros((L, L), jnp.float32) if need_weights else None

    for hh in range(hb):                            # static unroll over heads
        q_h = q[:, hh, :]                           # (L, D)
        k_h = k[:, hh, :]
        v_h = v[:, hh, :]

        s = lax.dot_general(q_h, k_h, (((1,), (1,)), ((), ())),
                            preferred_element_type=jnp.float32)    # (L, L)
        qe = lax.dot_general(q_h, er, (((1,), (1,)), ((), ())),
                             preferred_element_type=jnp.float32)   # (L, L)
        s = s + skew(qe)

        # numerically stable softmax over the src dimension (f32)
        m = jnp.max(s, axis=-1, keepdims=True)
        e = jnp.exp(s - m)
        denom = jnp.sum(e, axis=-1, keepdims=True)
        # TODO(synk): attention dropout / attn_mask / key_padding_mask /
        # bias_kv / add_zero_attn branches are not exercised by this config.
        if need_weights:
            p = e * pl.reciprocal(denom, approx=True)
            out_h = lax.dot_general(p.astype(v_h.dtype), v_h,
                                    (((1,), (0,)), ((), ())),
                                    preferred_element_type=jnp.float32)
            w_acc = w_acc + p
        else:
            # fold the normalization after P@V: L*D multiplies instead of L*L
            out_h = lax.dot_general(e.astype(v_h.dtype), v_h,
                                    (((1,), (0,)), ((), ())),
                                    preferred_element_type=jnp.float32)
            out_h = out_h * pl.reciprocal(denom, approx=True)

        o_ref[:, hh, :] = out_h.astype(o_ref.dtype)

    if need_weights:
        w_ref[...] = (w_acc * inv_heads).astype(w_ref.dtype)


def _pick_heads_per_block(num_heads, batch):
    """Heads per grid step.  hb is the second-minor block dim, so it must be
    num_heads (full dim) or a multiple of 8 ((8,128) tiling rule).  VMEM use is
    dominated by the per-head (L,L) working set (reused across the unrolled
    head loop), so default to all heads; when batch == 1 try to split heads so
    both TensorCores get work."""
    if batch >= 2 or num_heads == 1:
        return num_heads
    for cand in (num_heads // 2, 8):
        if cand >= 1 and num_heads % cand == 0 and (cand % 8 == 0 or cand == num_heads):
            return cand
    return num_heads
    # TODO(synk): for long sequences (L >= ~1024) a flash-style tiling over the
    # key axis (online softmax) is required on v7x's 64 MiB VMEM; the ~6 L*L
    # f32 temporaries here do not fit and this kernel does not implement it.


def _make_qkv_index_map(sel):
    def index_map(b, hg):
        return (0, b, sel, hg, 0)
    return index_map


def pallas_attention_rpr(qkv, er_valid, *, hb, inv_heads, out_dtype,
                         need_weights):
    """qkv: (L, B, 3, H, D) sequence-major projection output (q rows already
    scaled by 1/sqrt(D)); er_valid: (L, D).  Returns (L, B, H, D) attention
    output and, if need_weights, per-head-group weight partials
    (B, H//hb, L, L) already scaled by 1/H."""
    L, B, three, H, D = qkv.shape
    assert three == 3 and H % hb == 0
    grid = (B, H // hb)

    in_specs = [
        pl.BlockSpec((L, None, None, hb, D), _make_qkv_index_map(0)),   # q
        pl.BlockSpec((L, None, None, hb, D), _make_qkv_index_map(1)),   # k
        pl.BlockSpec((L, None, None, hb, D), _make_qkv_index_map(2)),   # v
        pl.BlockSpec((L, D), lambda b, hg: (0, 0)),                     # Er
    ]
    o_spec = pl.BlockSpec((L, None, hb, D), lambda b, hg: (0, b, hg, 0))

    kernel = functools.partial(_attn_rpr_kernel, inv_heads=inv_heads,
                               need_weights=need_weights,
                               use_roll=(L % 128 == 0))
    cp = pltpu.CompilerParams(
        dimension_semantics=("parallel", "parallel"),
        vmem_limit_bytes=_VMEM_LIMIT)

    if need_weights:
        out_shape = (jax.ShapeDtypeStruct((L, B, H, D), out_dtype),
                     jax.ShapeDtypeStruct((B, H // hb, L, L), jnp.float32))
        out_specs = (o_spec,
                     pl.BlockSpec((None, None, L, L), lambda b, hg: (b, hg, 0, 0)))
        return pl.pallas_call(kernel, out_shape=out_shape, grid=grid,
                              in_specs=in_specs, out_specs=out_specs,
                              compiler_params=cp)(qkv, qkv, qkv, er_valid)
    else:
        out_shape = jax.ShapeDtypeStruct((L, B, H, D), out_dtype)
        return pl.pallas_call(kernel, out_shape=out_shape, grid=grid,
                              in_specs=in_specs, out_specs=o_spec,
                              compiler_params=cp)(qkv, qkv, qkv, er_valid)


# ----------------------------------------------------------------------------
# Module wrapper (parameter setup + free reshapes only -- no XLA transposes)
# ----------------------------------------------------------------------------
def _xavier_uniform(key, shape):
    fan_out, fan_in = shape
    a = math.sqrt(6.0 / (fan_in + fan_out))
    return jax.random.uniform(key, shape, jnp.float32, -a, a)


class MultiheadAttentionRPRPallas:
    def __init__(self, embed_dim, num_heads, er_len, key,
                 compute_dtype=jnp.bfloat16):
        assert embed_dim % num_heads == 0
        self.embed_dim = embed_dim
        self.num_heads = num_heads
        self.head_dim = embed_dim // num_heads
        self.compute_dtype = compute_dtype
        E, D = embed_dim, self.head_dim

        k1, k2, k3 = jax.random.split(key, 3)
        # f32 master parameters (match the torch module)
        self.in_proj_weight = _xavier_uniform(k1, (3 * E, E))
        self.in_proj_bias = jnp.zeros((3 * E,), jnp.float32)
        self.out_proj_weight = _xavier_uniform(k2, (E, E))
        self.out_proj_bias = jnp.zeros((E,), jnp.float32)
        self.Er = jax.random.uniform(k3, (er_len, D), jnp.float32)

        # Pre-folded / pre-cast kernel-side copies (done once, not per call):
        # 1/sqrt(D) folded into the q rows of the in-projection.
        scaling = float(D) ** -0.5
        w_fold = jnp.concatenate(
            [self.in_proj_weight[:E] * scaling, self.in_proj_weight[E:]], axis=0)
        b_fold = jnp.concatenate(
            [self.in_proj_bias[:E] * scaling, self.in_proj_bias[E:]], axis=0)
        self._w_in_c = w_fold.astype(compute_dtype)
        self._b_in = b_fold.astype(jnp.float32).reshape(1, 3 * E)
        self._w_out_c = self.out_proj_weight.astype(compute_dtype)
        self._b_out = self.out_proj_bias.reshape(1, E)
        self._er_c = self.Er.astype(compute_dtype)

    def __call__(self, query, key_, value, need_weights=True):
        tgt_len, bsz, E = query.shape
        assert E == self.embed_dim
        H, D = self.num_heads, self.head_dim
        cd = self.compute_dtype

        if (query is key_) and (key_ is value):
            # fused qkv projection: one (M, 3E) matmul, lane-dense bf16 output
            qkv2d = pallas_linear(query.reshape(-1, E), self._w_in_c,
                                  self._b_in, out_dtype=cd)
            qkv = qkv2d.reshape(tgt_len, bsz, 3, H, D)      # free reshape
        else:
            assert key_.shape[0] == tgt_len and value.shape[0] == tgt_len, \
                "RPR skew path requires src_len == tgt_len"
            q2 = pallas_linear(query.reshape(-1, E), self._w_in_c[:E],
                               self._b_in[:, :E], out_dtype=cd)
            k2 = pallas_linear(key_.reshape(-1, E), self._w_in_c[E:2 * E],
                               self._b_in[:, E:2 * E], out_dtype=cd)
            v2 = pallas_linear(value.reshape(-1, E), self._w_in_c[2 * E:],
                               self._b_in[:, 2 * E:], out_dtype=cd)
            qkv = jnp.stack([q2, k2, v2], axis=1).reshape(tgt_len, bsz, 3, H, D)

        # _get_valid_embedding
        er_len = self.Er.shape[0]
        assert er_len >= tgt_len
        er_valid = self._er_c[er_len - tgt_len:]            # (L, D)

        hb = _pick_heads_per_block(H, bsz)
        if need_weights:
            attn_out, w_part = pallas_attention_rpr(
                qkv, er_valid, hb=hb, inv_heads=1.0 / H, out_dtype=cd,
                need_weights=True)
            w_avg = jnp.sum(w_part, axis=1)                 # (B, L, L)
        else:
            attn_out = pallas_attention_rpr(
                qkv, er_valid, hb=hb, inv_heads=1.0 / H, out_dtype=cd,
                need_weights=False)
            w_avg = None

        # (L, B, H, D) -> (L*B, E) is a free reshape; out projection in f32
        out = pallas_linear(attn_out.reshape(-1, E), self._w_out_c,
                            self._b_out, out_dtype=jnp.float32)
        return out.reshape(tgt_len, bsz, E), w_avg


# ----------------------------------------------------------------------------
# Pure-JAX reference (literal port of the torch code) for verification
# ----------------------------------------------------------------------------
def _ref_skew(qe):
    sz = qe.shape[1]
    mask = jnp.flip(jnp.triu(jnp.ones((sz, sz), jnp.float32)), axis=0)
    qe = mask * qe
    qe = jnp.pad(qe, ((0, 0), (0, 0), (1, 0)))
    qe = qe.reshape(qe.shape[0], qe.shape[2], qe.shape[1])
    return qe[:, 1:, :]


def _ref_linear(x, w, b):
    return jnp.einsum("...k,nk->...n", x, w,
                      precision=lax.Precision.HIGHEST) + b


def reference_forward(mod, query, key_, value):
    tgt_len, bsz, E = query.shape
    H, D = mod.num_heads, mod.head_dim
    scaling = float(D) ** -0.5
    W, bI = mod.in_proj_weight, mod.in_proj_bias
    q = _ref_linear(query, W[:E], bI[:E]) * scaling
    k = _ref_linear(key_, W[E:2 * E], bI[E:2 * E])
    v = _ref_linear(value, W[2 * E:], bI[2 * E:])
    q = q.reshape(tgt_len, bsz * H, D).transpose(1, 0, 2)
    k = k.reshape(-1, bsz * H, D).transpose(1, 0, 2)
    v = v.reshape(-1, bsz * H, D).transpose(1, 0, 2)
    src_len = k.shape[1]
    attn = jnp.einsum("bld,bmd->blm", q, k, precision=lax.Precision.HIGHEST)
    er_valid = mod.Er[max(0, mod.Er.shape[0] - q.shape[1]):]
    qe = jnp.einsum("hld,md->hlm", q, er_valid, precision=lax.Precision.HIGHEST)
    attn = attn + _ref_skew(qe)
    attn = jax.nn.softmax(attn, axis=-1)
    out = jnp.einsum("blm,bmd->bld", attn, v, precision=lax.Precision.HIGHEST)
    out = out.transpose(1, 0, 2).reshape(tgt_len, bsz, E)
    out = _ref_linear(out, mod.out_proj_weight, mod.out_proj_bias)
    w_avg = attn.reshape(bsz, H, tgt_len, src_len).sum(axis=1) / H
    return out, w_avg


def _max_rel_err(a, b):
    return float(jnp.max(jnp.abs(a - b)) / (jnp.max(jnp.abs(b)) + 1e-6))


# ----------------------------------------------------------------------------
if __name__ == "__main__":
    def run_case(L, B, E, H, er_len, key):
        k_param, k_x = jax.random.split(key)
        mod = MultiheadAttentionRPRPallas(E, H, er_len, k_param,
                                          compute_dtype=jnp.bfloat16)
        x = jax.random.normal(k_x, (L, B, E), jnp.float32)  # self-attention

        out, w_avg = mod(x, x, x, need_weights=True)
        out, w_avg = jax.block_until_ready((out, w_avg))

        ref_out, ref_w = reference_forward(mod, x, x, x)
        assert out.shape == (L, B, E) and w_avg.shape == (B, L, L)
        assert _max_rel_err(out, ref_out) < 5e-2
        assert _max_rel_err(w_avg, ref_w) < 5e-2

        # need_weights=False path (folded normalization, no weights output)
        out_nw, w_none = mod(x, x, x, need_weights=False)
        out_nw = jax.block_until_ready(out_nw)
        assert w_none is None
        assert _max_rel_err(out_nw, ref_out) < 5e-2

    root = jax.random.PRNGKey(0)
    k_small, k_roll = jax.random.split(root)

    # small shapes (concat-fallback skew path, exercises _get_valid_embedding)
    run_case(L=8, B=2, E=32, H=4, er_len=12, key=k_small)
    # lane-aligned shapes (L % 128 == 0 -> pltpu.roll XLU skew path)
    run_case(L=128, B=2, E=64, H=4, er_len=128, key=k_roll)

    print("KERNEL_OK")
</pallas_src>

<mosaic_0001>
module attributes {stable_mosaic.version = 11 : i64} {
  func.func @_linear_kernel(%arg0: i32, %arg1: i32, %arg2: i32, %arg3: memref<16x32xf32, #tpu.memory_space<vmem>>, %arg4: memref<96x32xbf16, #tpu.memory_space<vmem>>, %arg5: memref<1x96xf32, #tpu.memory_space<vmem>>, %arg6: memref<16x96xbf16, #tpu.memory_space<vmem>>, %arg7: memref<16x96xf32, #tpu.memory_space<vmem>>) attributes {dimension_semantics = [#tpu.dimension_semantics<parallel>, #tpu.dimension_semantics<parallel>, #tpu.dimension_semantics<arbitrary>], iteration_bounds = array<i64: 1, 1, 1>, scalar_prefetch = 0 : i64, scratch_operands = 1 : i64, tpu.core_type = #tpu.core_type<tc>, window_params = [{transform_indices = @transform_0, window_bounds = array<i64: 16, 32>}, {transform_indices = @transform_1, window_bounds = array<i64: 96, 32>}, {transform_indices = @transform_2, window_bounds = array<i64: 1, 96>}, {transform_indices = @transform_3, window_bounds = array<i64: 16, 96>}]} {
    %c0_i32 = arith.constant 0 : i32
    %0 = arith.cmpi eq, %arg2, %c0_i32 : i32
    %1 = arith.extui %0 : i1 to i32
    %c0_i32_0 = arith.constant 0 : i32
    %2 = arith.cmpi ne, %1, %c0_i32_0 : i32
    scf.if %2 {
      %cst_10 = arith.constant 0.000000e+00 : f32
      %13 = vector.broadcast %cst_10 : f32 to vector<16x96xf32>
      %c0_11 = arith.constant 0 : index
      %c0_12 = arith.constant 0 : index
      %14 = vector.load %arg7[%c0_11, %c0_12] : memref<16x96xf32, #tpu.memory_space<vmem>>, vector<16x96xf32>
      tpu.vector_store %arg7[%c0_11, %c0_12], %13 {strides = array<i32>} : memref<16x96xf32, #tpu.memory_space<vmem>>, vector<16x96xf32>,
    } else {
    }
    %c0 = arith.constant 0 : index
    %c0_1 = arith.constant 0 : index
    %3 = vector.load %arg3[%c0, %c0_1] : memref<16x32xf32, #tpu.memory_space<vmem>>, vector<16x32xf32>
    %4 = arith.truncf %3 : vector<16x32xf32> to vector<16x32xbf16>
    %c0_2 = arith.constant 0 : index
    %c0_3 = arith.constant 0 : index
    %5 = vector.load %arg7[%c0_2, %c0_3] : memref<16x96xf32, #tpu.memory_space<vmem>>, vector<16x96xf32>
    %c0_4 = arith.constant 0 : index
    %c0_5 = arith.constant 0 : index
    %6 = vector.load %arg4[%c0_4, %c0_5] : memref<96x32xbf16, #tpu.memory_space<vmem>>, vector<96x32xbf16>
    %cst = arith.constant dense<0.000000e+00> : vector<16x96xf32>
    %7 = tpu.matmul %4, %6, %cst {dimension_numbers = #tpu.dot_dimension_numbers<[1], [1], [0], [0], [0, 0, 1, 0], [], []>} : vector<16x32xbf16>, vector<96x32xbf16>, vector<16x96xf32> -> vector<16x96xf32>
    %8 = arith.addf %5, %7 : vector<16x96xf32>
    %c0_6 = arith.constant 0 : index
    %c0_7 = arith.constant 0 : index
    %9 = vector.load %arg7[%c0_6, %c0_7] : memref<16x96xf32, #tpu.memory_space<vmem>>, vector<16x96xf32>
    tpu.vector_store %arg7[%c0_6, %c0_7], %8 {strides = array<i32>} : memref<16x96xf32, #tpu.memory_space<vmem>>, vector<16x96xf32>,
    %c0_i32_8 = arith.constant 0 : i32
    %10 = arith.cmpi eq, %arg2, %c0_i32_8 : i32
    %11 = arith.extui %10 : i1 to i32
    %c0_i32_9 = arith.constant 0 : i32
    %12 = arith.cmpi ne, %11, %c0_i32_9 : i32
    scf.if %12 {
      %c0_10 = arith.constant 0 : index
      %c0_11 = arith.constant 0 : index
      %13 = vector.load %arg7[%c0_10, %c0_11] : memref<16x96xf32, #tpu.memory_space<vmem>>, vector<16x96xf32>
      %c0_12 = arith.constant 0 : index
      %c0_13 = arith.constant 0 : index
      %14 = vector.load %arg5[%c0_12, %c0_13] : memref<1x96xf32, #tpu.memory_space<vmem>>, vector<1x96xf32>
      %15 = vector.broadcast %14 : vector<1x96xf32> to vector<16x96xf32>
      %16 = arith.addf %13, %15 : vector<16x96xf32>
      %17 = arith.truncf %16 : vector<16x96xf32> to vector<16x96xbf16>
      %c0_14 = arith.constant 0 : index
      %c0_15 = arith.constant 0 : index
      %18 = vector.load %arg6[%c0_14, %c0_15] : memref<16x96xbf16, #tpu.memory_space<vmem>>, vector<16x96xbf16>
      tpu.vector_store %arg6[%c0_14, %c0_15], %17 {strides = array<i32>} : memref<16x96xbf16, #tpu.memory_space<vmem>>, vector<16x96xbf16>,
    } else {
    }
    return
  }
  func.func @transform_0(%arg0: i32, %arg1: i32, %arg2: i32) -> (i32, i32) {
    %c0_i32 = arith.constant 0 : i32
    return %arg0, %arg2 : i32, i32
  }
  func.func @transform_1(%arg0: i32, %arg1: i32, %arg2: i32) -> (i32, i32) {
    %c0_i32 = arith.constant 0 : i32
    return %arg1, %arg2 : i32, i32
  }
  func.func @transform_2(%arg0: i32, %arg1: i32, %arg2: i32) -> (i32, i32) {
    %c0_i32 = arith.constant 0 : i32
    %c0_i32_0 = arith.constant 0 : i32
    return %c0_i32, %arg1 : i32, i32
  }
  func.func @transform_3(%arg0: i32, %arg1: i32, %arg2: i32) -> (i32, i32) {
    %c0_i32 = arith.constant 0 : i32
    return %arg0, %arg1 : i32, i32
  }
}

</mosaic_0001>

<bundles_post_ra>
// kernel: tpu_custom_call.1
= control target key start
LH: loop header
LB: loop body
LE: loop exit
PB: predicated region body
PF: predicated region fallthrough
CT: control target
= control target key end

     0   :  { %v247_v1 = vmov 0.0   ;;  %vm70_vm0 = vcmask 261120   ;;  %vm20_vm1 = vcmask 785408   ;;  %vm248_vm2 = vmmov 0   ;;  %s313_s0 = inlined_call_operand.vmem [shape: f32[16,32], index: 0, kind: input, shape index: {}]   ;;  %s314_s1 = inlined_call_operand.vmem [shape: bf16[96,32], index: 1, kind: input, shape index: {}]   ;;  %s315_s2 = inlined_call_operand.vmem [shape: f32[1,96], index: 2, kind: input, shape index: {}]   ;;  %s316_s3 = inlined_call_operand.hbm [shape: bf16[16,96], index: 3, kind: output, shape index: {}]  }
   0x1   :  { %v219_v0 = vld [vmem:[%s314_s1 + $0x28] sm:$0xff]   ;;  %198 = vmatprep.subr.bf16.mxu0 %v247_v1  ;;  %v220_v3 = vld [vmem:[%s314_s1 + $0x20] sm:$0xff]   ;;  %210 = vmatprep.mubr.msk.bf16.mxu0 %vm248_vm2, %v247_v1  ;;  %21 = vst.msk [vmem:[#allocation2] sm:$0xff] %vm20_vm1, %v247_v1  ;;  %22 = vst.msk [vmem:[#allocation2 + $0x8] sm:$0xff] %vm20_vm1, %v247_v1 }
   0x2   :  { %v90_v2 = vsel %vm70_vm0, %v219_v0, 0 }
   0x3   :  { %199 = vmatpush3.bf16.xpose.msra.mxu0 %v90_v2 }
   0x4   :  { %200 = vmatprep.subr.bf16.mxu0 %v247_v1 }
   0x5   :  { %8 = vsyncpa [#allocation4], 0  ;;  %v87_v4 = vsel %vm70_vm0, %v220_v3, 0  ;;  %v221_v5 = vld [vmem:[%s314_s1 + $0x18] sm:$0xff]   ;;  %v222_v7 = vld [vmem:[%s314_s1 + $0x10] sm:$0xff]   ;;  %vm160_vm3 = vcmask 781312  }
   0x6   :  { %v84_v6 = vsel %vm70_vm0, %v221_v5, 0  ;;  %v81_v8 = vsel %vm70_vm0, %v222_v7, 0  ;;  %v223_v9 = vld [vmem:[%s314_s1 + $0x8] sm:$0xff]   ;;  %v224_v11 = vld [vmem:[%s314_s1] sm:$0xff]  }
   0x7   :  { %v78_v10 = vsel %vm70_vm0, %v223_v9, 0  ;;  %v75_v12 = vsel %vm70_vm0, %v224_v11, 0  ;;  %v23_v13 = vld [vmem:[%s313_s0] sm:$0xff]  ;;  %v24_v14 = vld [vmem:[%s313_s0 + $0x8] sm:$0xff]  ;;  %s249_s0 = smov [#allocation3]  }
   0x8   :  { %v25_v15 = vpack.c.bf16 %v24_v14, %v23_v13  ;;  %v26_v16 = vld [vmem:[#allocation2] sm:$0xff]  ;;  %v27_v20 = vld [vmem:[#allocation2 + $0x8] sm:$0xff]  ;;  %s168_s29 = sshll.u32 %s249_s0, 4  ;;  %s169_s29 = int_to_ptr.vmem [resolvable:$true] %s168_s29 }
   0x9   :  { %v186_v24 = vld [vmem:[%s315_s2] ss:$0 sm:$0xff]  ;;  %s225_s30 = scalar_lea.vmem %s169_s29, 128  ;;  %p230_p1 = scmp.lt.s32.totalorder %s169_s29, %s169_s29 }
   0xa   :  { %p226_p0 = scmp.ne.s32.totalorder %s169_s29, %s225_s30  ;;  %p231_p2 = scmp.lt.s32.totalorder %s225_s30, %s225_s30 }
   0xb   :  { %201 = vmatpush3.bf16.xpose.msra.mxu0 %v87_v4 }
   0xc   :  { %202 = vmatprep.subr.bf16.mxu0 %v247_v1  ;;  %p232_p3 = por %p231_p2, %p230_p1 }
   0xe   :  { %p233_p4 = pnand %p232_p3, %p226_p0 }
  0x13   :  { %203 = vmatpush3.bf16.xpose.msra.mxu0 %v84_v6 }
  0x14   :  { %204 = vmatprep.subr.bf16.mxu0 %v247_v1 }
  0x1b   :  { %205 = vmatpush3.bf16.xpose.msra.mxu0 %v81_v8 }
  0x1c   :  { %206 = vmatprep.subr.bf16.mxu0 %v247_v1 }
  0x23   :  { %207 = vmatpush3.bf16.xpose.msra.mxu0 %v78_v10 }
  0x24   :  { %208 = vmatprep.subr.bf16.mxu0 %v247_v1 }
  0x2b   :  { %209 = vmatpush3.bf16.xpose.msra.mxu0 %v75_v12 }
  0x32   :  { %211 = vmatmul.mubr.msk.bf16.vlgmr.msra.gmra.mxu0 %vm70_vm0, %v25_v15 }
  0xf2   :  { %v126_v17 = vpop.f32.mrf.mxu0 }
  0xf3   :  { %v133_v18 = vadd.f32 %v126_v17, %v26_v16 }
  0xf4   :  { %v212_v19 = vpop.f32.mrf.mxu0 }
  0xf5   :  { %136 = vst.msk [vmem:[#allocation2] sm:$0xff] %vm20_vm1, %v133_v18 }
  0xf6   :  { %v129_v21 = vpop.f32.mrf.mxu0 }
  0xf7   :  { %v134_v22 = vadd.f32 %v129_v21, %v27_v20 }
  0xf8   :  { %v213_v23 = vpop.f32.mrf.mxu0 }
  0xf9   :  { %137 = vst.msk [vmem:[#allocation2 + $0x8] sm:$0xff] %vm20_vm1, %v134_v22 }
  0xfc   :  { %v141_v25 = vld [vmem:[#allocation2] sm:$0xff] }
  0xfd   :  { %v150_v26 = vadd.f32 %v186_v24, %v141_v25 }
  0xff   :  { %v189_v27 = vpack.c.bf16 %v150_v26, %v150_v26 }
 0x100   :  { %v142_v28 = vld [vmem:[#allocation2 + $0x8] sm:$0xff] }
 0x101   :  { %v151_v29 = vadd.f32 %v186_v24, %v142_v28  ;;  %161 = vst.msk [vmem:[#allocation3] sm:$0xf] %vm160_vm3, %v189_v27 }
 0x103   :  { %v190_v30 = vpack.c.bf16 %v151_v29, %v151_v29 }
 0x105   :  { %162 = vst.msk [vmem:[#allocation3 + $0x4] sm:$0xf] %vm160_vm3, %v190_v30 }
 0x106   :  { %236 = shalt.err (!%p233_p4)
}
 0x107   :  { %s250_s2 = smov 64   ;;  %s251_s4 = smov 4  }
 0x108   :  { %174 = dma.vmem_to_hbm [thread:$0]  %s169_s29, 128, %s316_s3, [#allocation4], %s250_s2, %s250_s2, %s251_s4  }
 0x109   :  { %245 = dma.done.wait [#allocation4], 128  }
 0x10a   :  { %246 = vsyncadd [#allocation4], 4294967168 }
 0x10b   :  { %178 = vsyncpa [#allocation4], 1 }

</bundles_post_ra>
